<compile_context>
chip_gen: v5e
topology: v5e:2x2
jax: 0.10.0
libtpu: 0.0.40
codegen_flags: <defaults>
</compile_context>

<pallas_src>
import functools

import jax
import jax.numpy as jnp
from jax import lax
from jax.experimental import pallas as pl
from jax.experimental.pallas import tpu as pltpu


def _kld_kernel(x_ref, t_ref, o_ref, *, inv_temp_s, inv_temp_t):
    x = x_ref[...].astype(jnp.float32)   # student logits tile  [tile_n, D]
    t = t_ref[...].astype(jnp.float32)   # teacher logits tile  [tile_n, D]

    # F.normalize(., dim=1) clamps the L2 norm at 1e-12; clamp the squared
    # norm at 1e-24 and use rsqrt (EUP slot), folding in 1/temp.
    eps_sq = jnp.float32(1e-24)
    x_scale = lax.rsqrt(
        jnp.maximum(jnp.sum(x * x, axis=-1, keepdims=True), eps_sq)
    ) * jnp.float32(inv_temp_s)
    t_scale = lax.rsqrt(
        jnp.maximum(jnp.sum(t * t, axis=-1, keepdims=True), eps_sq)
    ) * jnp.float32(inv_temp_t)

    xs = x * x_scale
    ts = t * t_scale

    # log_softmax(xs) along feature (lane) axis, numerically stable.
    x_max = jnp.max(xs, axis=-1, keepdims=True)
    x_sh = xs - x_max
    x_lse = jnp.log(jnp.sum(jnp.exp(x_sh), axis=-1, keepdims=True))
    log_p = x_sh - x_lse

    # softmax(ts) and its log along feature axis.
    t_max = jnp.max(ts, axis=-1, keepdims=True)
    t_sh = ts - t_max
    t_exp = jnp.exp(t_sh)
    t_sum = jnp.sum(t_exp, axis=-1, keepdims=True)
    q = t_exp * pl.reciprocal(t_sum, approx=False)
    log_q = t_sh - jnp.log(t_sum)

    # Per-tile partial KL sum, broadcast into a lane-dense (1,8,128) block
    # (unmasked vst; the scalar is recovered at [:, 0, 0] in the epilogue).
    kl = q * (log_q - log_p)
    o_ref[...] = jnp.broadcast_to(jnp.sum(kl), o_ref.shape)


def _round_up(x, m):
    return ((x + m - 1) // m) * m


def kld_pallas(inputs, targets, temp_t, temp_s, *, tile_n=None):
    """KLD loss (reduction='batchmean') via a Pallas TPU kernel."""
    assert inputs.shape == targets.shape and inputs.ndim == 2
    n, d = inputs.shape

    if tile_n is None:
        # 2 inputs x 2 pipeline buffers per tile; keep them under ~12 MiB so the
        # 32 MiB scoped-VMEM limit is safe on every generation (incl. v7x).
        itemsize = max(jnp.dtype(inputs.dtype).itemsize,
                       jnp.dtype(targets.dtype).itemsize)
        budget_bytes = 12 * 1024 * 1024
        rows = budget_bytes // (2 * 2 * d * itemsize)
        tile_n = int(min(max(rows, 8), 1024))
        tile_n = min(tile_n, _round_up(n, 8))
        tile_n = max(8, (tile_n // 8) * 8)

    # Pad the batch to a tile multiple. Zero rows contribute exactly 0 to the
    # KL sum (student and teacher both reduce to the same uniform softmax).
    n_pad = _round_up(n, tile_n)
    if n_pad != n:
        pad = n_pad - n
        inputs = jnp.pad(inputs, ((0, pad), (0, 0)))
        targets = jnp.pad(targets, ((0, pad), (0, 0)))
    num_tiles = n_pad // tile_n

    kernel = functools.partial(
        _kld_kernel,
        inv_temp_s=float(1.0 / temp_s),
        inv_temp_t=float(1.0 / temp_t),
    )

    partials = pl.pallas_call(
        kernel,
        out_shape=jax.ShapeDtypeStruct((num_tiles, 8, 128), jnp.float32),
        grid_spec=pl.GridSpec(
            grid=(num_tiles,),
            in_specs=[
                pl.BlockSpec((tile_n, d), lambda i: (i, 0)),
                pl.BlockSpec((tile_n, d), lambda i: (i, 0)),
            ],
            out_specs=pl.BlockSpec((1, 8, 128), lambda i: (i, 0, 0)),
        ),
        compiler_params=pltpu.CompilerParams(
            dimension_semantics=("parallel",),
            vmem_limit_bytes=32 * 1024 * 1024,
        ),
    )(inputs, targets)

    # reduction='batchmean': divide the total sum by the ORIGINAL batch size.
    return jnp.sum(partials[:, 0, 0]) / jnp.float32(n)


def _kld_ref(inputs, targets, temp_t, temp_s):
    """Pure-JAX reference mirroring the PyTorch module."""
    eps = 1e-12
    xn = inputs / jnp.maximum(
        jnp.linalg.norm(inputs, axis=1, keepdims=True), eps)
    tn = targets / jnp.maximum(
        jnp.linalg.norm(targets, axis=1, keepdims=True), eps)
    log_p = jax.nn.log_softmax(xn / temp_s, axis=1)
    q = jax.nn.softmax(tn / temp_t, axis=1)
    return jnp.sum(q * (jnp.log(q) - log_p)) / inputs.shape[0]


if __name__ == "__main__":
    key = jax.random.PRNGKey(0)
    k1, k2, k3, k4 = jax.random.split(key, 4)

    temp_t, temp_s = 4.0, 2.0

    # Small example consistent with the module: [batch, feature] logits.
    N, D = 16, 128
    inputs = jax.random.normal(k1, (N, D), dtype=jnp.float32)
    targets = jax.random.normal(k2, (N, D), dtype=jnp.float32)

    loss = kld_pallas(inputs, targets, temp_t, temp_s)
    loss = jax.block_until_ready(loss)
    ref = _kld_ref(inputs, targets, temp_t, temp_s)
    assert jnp.allclose(loss, ref, rtol=1e-4, atol=1e-6), (loss, ref)

    # Second check: non-multiple batch (exercises zero-padding) and a
    # multi-tile parallel grid (explicit small tile_n).
    N2, D2 = 100, 256
    inputs2 = jax.random.normal(k3, (N2, D2), dtype=jnp.float32)
    targets2 = jax.random.normal(k4, (N2, D2), dtype=jnp.float32)
    loss2 = kld_pallas(inputs2, targets2, temp_t, temp_s, tile_n=8)
    loss2 = jax.block_until_ready(loss2)
    ref2 = _kld_ref(inputs2, targets2, temp_t, temp_s)
    assert jnp.allclose(loss2, ref2, rtol=1e-4, atol=1e-6), (loss2, ref2)

    print("KERNEL_OK")
</pallas_src>

<mosaic_0001>
module attributes {stable_mosaic.version = 11 : i64} {
  func.func @_kld_kernel(%arg0: i32, %arg1: memref<16x128xf32, #tpu.memory_space<vmem>>, %arg2: memref<16x128xf32, #tpu.memory_space<vmem>>, %arg3: memref<1x8x128xf32, #tpu.memory_space<vmem>>) attributes {dimension_semantics = [#tpu.dimension_semantics<parallel>], iteration_bounds = array<i64: 1>, scalar_prefetch = 0 : i64, scratch_operands = 0 : i64, tpu.core_type = #tpu.core_type<tc>, window_params = [{transform_indices = @transform_0, window_bounds = array<i64: 16, 128>}, {transform_indices = @transform_1, window_bounds = array<i64: 16, 128>}, {transform_indices = @transform_2, window_bounds = array<i64: 1, 8, 128>}]} {
    %c0 = arith.constant 0 : index
    %c0_0 = arith.constant 0 : index
    %0 = vector.load %arg1[%c0, %c0_0] : memref<16x128xf32, #tpu.memory_space<vmem>>, vector<16x128xf32>
    %c0_1 = arith.constant 0 : index
    %c0_2 = arith.constant 0 : index
    %1 = vector.load %arg2[%c0_1, %c0_2] : memref<16x128xf32, #tpu.memory_space<vmem>>, vector<16x128xf32>
    %2 = arith.mulf %0, %0 : vector<16x128xf32>
    %cst = arith.constant dense<0.000000e+00> : vector<16xf32>
    %3 = vector.multi_reduction <add>, %2, %cst [1] : vector<16x128xf32> to vector<16xf32>
    %4 = vector.shape_cast %3 : vector<16xf32> to vector<16x1xf32>
    %cst_3 = arith.constant 1.000000e-24 : f32
    %5 = vector.broadcast %cst_3 : f32 to vector<16x1xf32>
    %6 = arith.maximumf %4, %5 : vector<16x1xf32>
    %7 = math.rsqrt %6 : vector<16x1xf32>
    %cst_4 = arith.constant 5.000000e-01 : f32
    %8 = vector.broadcast %cst_4 : f32 to vector<16x1xf32>
    %9 = arith.mulf %7, %8 : vector<16x1xf32>
    %10 = arith.mulf %1, %1 : vector<16x128xf32>
    %cst_5 = arith.constant dense<0.000000e+00> : vector<16xf32>
    %11 = vector.multi_reduction <add>, %10, %cst_5 [1] : vector<16x128xf32> to vector<16xf32>
    %12 = vector.shape_cast %11 : vector<16xf32> to vector<16x1xf32>
    %cst_6 = arith.constant 1.000000e-24 : f32
    %13 = vector.broadcast %cst_6 : f32 to vector<16x1xf32>
    %14 = arith.maximumf %12, %13 : vector<16x1xf32>
    %15 = math.rsqrt %14 : vector<16x1xf32>
    %cst_7 = arith.constant 2.500000e-01 : f32
    %16 = vector.broadcast %cst_7 : f32 to vector<16x1xf32>
    %17 = arith.mulf %15, %16 : vector<16x1xf32>
    %18 = vector.broadcast %9 : vector<16x1xf32> to vector<16x128xf32>
    %19 = arith.mulf %0, %18 : vector<16x128xf32>
    %20 = vector.broadcast %17 : vector<16x1xf32> to vector<16x128xf32>
    %21 = arith.mulf %1, %20 : vector<16x128xf32>
    %cst_8 = arith.constant dense<0xFF800000> : vector<16xf32>
    %22 = vector.multi_reduction <maximumf>, %19, %cst_8 [1] : vector<16x128xf32> to vector<16xf32>
    %23 = vector.shape_cast %22 : vector<16xf32> to vector<16x1xf32>
    %24 = vector.broadcast %23 : vector<16x1xf32> to vector<16x128xf32>
    %25 = arith.subf %19, %24 : vector<16x128xf32>
    %26 = math.exp %25 : vector<16x128xf32>
    %cst_9 = arith.constant dense<0.000000e+00> : vector<16xf32>
    %27 = vector.multi_reduction <add>, %26, %cst_9 [1] : vector<16x128xf32> to vector<16xf32>
    %28 = vector.shape_cast %27 : vector<16xf32> to vector<16x1xf32>
    %29 = math.log %28 : vector<16x1xf32>
    %30 = vector.broadcast %29 : vector<16x1xf32> to vector<16x128xf32>
    %31 = arith.subf %25, %30 : vector<16x128xf32>
    %cst_10 = arith.constant dense<0xFF800000> : vector<16xf32>
    %32 = vector.multi_reduction <maximumf>, %21, %cst_10 [1] : vector<16x128xf32> to vector<16xf32>
    %33 = vector.shape_cast %32 : vector<16xf32> to vector<16x1xf32>
    %34 = vector.broadcast %33 : vector<16x1xf32> to vector<16x128xf32>
    %35 = arith.subf %21, %34 : vector<16x128xf32>
    %36 = math.exp %35 : vector<16x128xf32>
    %cst_11 = arith.constant dense<0.000000e+00> : vector<16xf32>
    %37 = vector.multi_reduction <add>, %36, %cst_11 [1] : vector<16x128xf32> to vector<16xf32>
    %38 = vector.shape_cast %37 : vector<16xf32> to vector<16x1xf32>
    %39 = tpu.reciprocal %38 : vector<16x1xf32> -> vector<16x1xf32>
    %40 = vector.broadcast %39 : vector<16x1xf32> to vector<16x128xf32>
    %41 = arith.mulf %36, %40 : vector<16x128xf32>
    %42 = math.log %38 : vector<16x1xf32>
    %43 = vector.broadcast %42 : vector<16x1xf32> to vector<16x128xf32>
    %44 = arith.subf %35, %43 : vector<16x128xf32>
    %45 = arith.subf %44, %31 : vector<16x128xf32>
    %46 = arith.mulf %41, %45 : vector<16x128xf32>
    %47 = vector.shape_cast %46 : vector<16x128xf32> to vector<1x16x128xf32>
    %cst_12 = arith.constant dense<0.000000e+00> : vector<1xf32>
    %48 = vector.multi_reduction <add>, %47, %cst_12 [1, 2] : vector<1x16x128xf32> to vector<1xf32>
    %49 = vector.shape_cast %48 : vector<1xf32> to vector<1x1x1xf32>
    %50 = vector.extract %49[0, 0, 0] : f32 from vector<1x1x1xf32>
    %51 = vector.broadcast %50 : f32 to vector<1x8x128xf32>
    %c0_13 = arith.constant 0 : index
    %c0_14 = arith.constant 0 : index
    %c0_15 = arith.constant 0 : index
    %52 = vector.load %arg3[%c0_13, %c0_14, %c0_15] : memref<1x8x128xf32, #tpu.memory_space<vmem>>, vector<1x8x128xf32>
    tpu.vector_store %arg3[%c0_13, %c0_14, %c0_15], %51 {strides = array<i32>} : memref<1x8x128xf32, #tpu.memory_space<vmem>>, vector<1x8x128xf32>,
    return
  }
  func.func @transform_0(%arg0: i32) -> (i32, i32) {
    %c0_i32 = arith.constant 0 : i32
    %c0_i32_0 = arith.constant 0 : i32
    return %arg0, %c0_i32 : i32, i32
  }
  func.func @transform_1(%arg0: i32) -> (i32, i32) {
    %c0_i32 = arith.constant 0 : i32
    %c0_i32_0 = arith.constant 0 : i32
    return %arg0, %c0_i32 : i32, i32
  }
  func.func @transform_2(%arg0: i32) -> (i32, i32, i32) {
    %c0_i32 = arith.constant 0 : i32
    %c0_i32_0 = arith.constant 0 : i32
    %c0_i32_1 = arith.constant 0 : i32
    return %arg0, %c0_i32, %c0_i32_0 : i32, i32, i32
  }
}

</mosaic_0001>

<bundles_post_ra>
// kernel: tpu_custom_call.1
= control target key start
LH: loop header
LB: loop body
LE: loop exit
PB: predicated region body
PF: predicated region fallthrough
CT: control target
= control target key end

     0   :  { %7 = vsyncpa [#allocation3], 0  ;;  %s384_s0 = inlined_call_operand.hbm [shape: f32[16,128], index: 0, kind: input, shape index: {}]   ;;  %s385_s1 = inlined_call_operand.hbm [shape: f32[16,128], index: 1, kind: input, shape index: {}]   ;;  %s386_s2 = inlined_call_operand.hbm [shape: f32[1,8,128], index: 2, kind: output, shape index: {}]  }
   0x1   :  { %8 = vsyncpa [#allocation6], 0 }
   0x2   :  { %9 = vsyncpa [#allocation4], 0  ;;  %s14_s11 = sshll.u32 %s384_s0, 4  ;;  %s329_s12 = smov [#allocation2]   ;;  %s15_s11 = int_to_ptr.hbm [resolvable:$true] %s14_s11 }
   0x3   :  { %s16_s13 = sshll.u32 %s329_s12, 4  ;;  %s27_s16 = sshll.u32 %s385_s1, 4  ;;  %s17_s13 = int_to_ptr.vmem [resolvable:$true] %s16_s13  ;;  %s28_s16 = int_to_ptr.hbm [resolvable:$true] %s27_s16 }
   0x4   :  { %s330_s17 = smov 128   ;;  %s331_s18 = smov 8  }
   0x5   :  { %22 = dma.hbm_to_vmem [thread:$0]  %s15_s11, 256, %s17_s13, [#allocation3], %s330_s17, %s330_s17, %s331_s18  }
   0x6   :  { %s332_s19 = smov [#allocation5]  }
   0x7   :  { %s29_s20 = sshll.u32 %s332_s19, 4  ;;  %s30_s20 = int_to_ptr.vmem [resolvable:$true] %s29_s20 }
   0x8   :  { %35 = dma.hbm_to_vmem [thread:$0]  %s28_s16, 256, %s30_s20, [#allocation6], %s330_s17, %s330_s17, %s331_s18  }
   0x9   :  { %323 = dma.done.wait [#allocation3], 256  }
   0xa   :  { %324 = vsyncadd [#allocation3], 4294967040 }
   0xb   :  { %325 = dma.done.wait [#allocation6], 256  }
   0xc   :  { %326 = vsyncadd [#allocation6], 4294967040  ;;  %v46_v0 = vld [vmem:[#allocation5] sm:$0xff]  ;;  %v44_v1 = vld [vmem:[#allocation2] sm:$0xff]  ;;  %s205_s21 = sshll.u32 %s386_s2, 4  ;;  %s333_s22 = smov [#allocation7]   ;;  %s206_s21 = int_to_ptr.hbm [resolvable:$true] %s205_s21 }
   0xd   :  { %v78_v2 = vmul.f32 %v46_v0, %v46_v0  ;;  %v48_v3 = vmul.f32 %v44_v1, %v44_v1  ;;  %v355_v4 = vld [vmem:[#allocation5 + $0x8] sm:$0xff]  ;;  %v357_v5 = vld [vmem:[#allocation2 + $0x8] sm:$0xff]  ;;  %s203_s23 = sshll.u32 %s333_s22, 4  ;;  %s204_s23 = int_to_ptr.vmem [resolvable:$true] %s203_s23 }
   0xe   :  { %v79_v6 = vmul.f32 %v355_v4, %v355_v4  ;;  %v49_v7 = vmul.f32 %v357_v5, %v357_v5 }
   0xf   :  { %80 = vadd.xlane.f32.xlu0 %v78_v2  ;;  %50 = vadd.xlane.f32.xlu1 %v48_v3 }
  0x17   :  { %82 = vadd.xlane.f32.xlu0 %v79_v6  ;;  %52 = vadd.xlane.f32.xlu1 %v49_v7 }
  0x82   :  { %v81_v8 = vpop.xlane.xlu0 %80  ;;  %v51_v9 = vpop.xlane.xlu1 %50 }
  0x83   :  { %v84_v10 = vmax.f32 %v81_v8, 1e-24  ;;  %v54_v11 = vmax.f32 %v51_v9, 1e-24 }
  0x85   :  { %223 = vrsqrt.f32 %v84_v10  ;;  %vm62_vm1 = vweird.f32 %v54_v11  ;;  %vm92_vm3 = vweird.f32 %v84_v10 }
  0x86   :  { %225 = vrsqrt.f32 %v54_v11 }
  0x8a   :  { %v83_v12 = vpop.xlane.xlu0 %82  ;;  %v53_v13 = vpop.xlane.xlu1 %52 }
  0x8b   :  { %v224_v14 = vpop.eup %223  ;;  %v85_v15 = vmax.f32 %v83_v12, 1e-24  ;;  %v55_v16 = vmax.f32 %v53_v13, 1e-24 }
  0x8c   :  { %v226_v17 = vpop.eup %225  ;;  %v87_v18 = vmul.f32 %v224_v14, %v84_v10  ;;  %vm93_vm0 = vweird.f32 %v224_v14 }
  0x8d   :  { %v57_v19 = vmul.f32 %v226_v17, %v54_v11  ;;  %227 = vrsqrt.f32 %v85_v15  ;;  %vm63_vm2 = vweird.f32 %v226_v17  ;;  %vm94_vm4 = vmor %vm92_vm3, %vm93_vm0  ;;  %vm72_vm7 = vweird.f32 %v55_v16 }
  0x8e   :  { %v88_v20 = vmul.f32 %v224_v14, %v87_v18  ;;  %229 = vrsqrt.f32 %v55_v16  ;;  %vm64_vm5 = vmor %vm62_vm1, %vm63_vm2  ;;  %vm102_vm9 = vweird.f32 %v85_v15 }
  0x8f   :  { %v58_v21 = vmul.f32 %v226_v17, %v57_v19 }
  0x90   :  { %v89_v22 = vmul.f32 0.5, %v88_v20 }
  0x91   :  { %v59_v23 = vmul.f32 0.5, %v58_v21 }
  0x92   :  { %v90_v24 = vsub.f32 1.5, %v89_v22 }
  0x93   :  { %v228_v25 = vpop.eup %227  ;;  %v60_v26 = vsub.f32 1.5, %v59_v23 }
  0x94   :  { %v230_v27 = vpop.eup %229  ;;  %v97_v28 = vmul.f32 %v228_v25, %v85_v15  ;;  %v91_v29 = vmul.f32 %v224_v14, %v90_v24  ;;  %vm103_vm6 = vweird.f32 %v228_v25 }
  0x95   :  { %v67_v30 = vmul.f32 %v230_v27, %v55_v16  ;;  %v61_v31 = vmul.f32 %v226_v17, %v60_v26  ;;  %vm73_vm8 = vweird.f32 %v230_v27  ;;  %vm104_vm10 = vmor %vm102_vm9, %vm103_vm6 }
  0x96   :  { %v98_v32 = vmul.f32 %v228_v25, %v97_v28  ;;  %v95_v33 = vsel %vm94_vm4, %v224_v14, %v91_v29  ;;  %vm74_vm11 = vmor %vm72_vm7, %vm73_vm8 }
  0x97   :  { %v68_v34 = vmul.f32 %v230_v27, %v67_v30  ;;  %v106_v35 = vmul.f32 0.25, %v95_v33  ;;  %v65_v36 = vsel %vm64_vm5, %v226_v17, %v61_v31 }
  0x98   :  { %v99_v37 = vmul.f32 0.5, %v98_v32  ;;  %v76_v38 = vmul.f32 0.5, %v65_v36 }
  0x99   :  { %v69_v39 = vmul.f32 0.5, %v68_v34  ;;  %v110_v40 = vmul.f32 %v106_v35, %v46_v0 }
  0x9a   :  { %v100_v41 = vsub.f32 1.5, %v99_v37  ;;  %v108_v42 = vmul.f32 %v76_v38, %v44_v1 }
  0x9b   :  { %v70_v43 = vsub.f32 1.5, %v69_v39  ;;  %132 = vmax.xlane.f32.xlu2 %v110_v40 }
  0x9c   :  { %112 = vmax.xlane.f32.xlu0 %v108_v42  ;;  %v101_v44 = vmul.f32 %v228_v25, %v100_v41 }
  0x9d   :  { %v71_v45 = vmul.f32 %v230_v27, %v70_v43 }
  0x9e   :  { %v105_v46 = vsel %vm104_vm10, %v228_v25, %v101_v44 }
  0x9f   :  { %v107_v47 = vmul.f32 0.25, %v105_v46  ;;  %v75_v48 = vsel %vm74_vm11, %v230_v27, %v71_v45 }
  0xa0   :  { %v77_v49 = vmul.f32 0.5, %v75_v48 }
  0xa1   :  { %v111_v50 = vmul.f32 %v107_v47, %v355_v4 }
  0xa2   :  { %v109_v51 = vmul.f32 %v77_v49, %v357_v5 }
  0xa3   :  { %134 = vmax.xlane.f32.xlu2 %v111_v50 }
  0xa4   :  { %114 = vmax.xlane.f32.xlu1 %v109_v51 }
 0x10e   :  { %v133_v52 = vpop.xlane.xlu2 %132 }
 0x10f   :  { %v365_v53 = vsub.f32 %v110_v40, %v133_v52  ;;  %v113_v54 = vpop.xlane.xlu0 %112 }
 0x110   :  { %v367_v55 = vsub.f32 %v108_v42, %v113_v54 }
 0x111   :  { %v138_v56 = vmul.f32 1.442695, %v365_v53 }
 0x112   :  { %v118_v57 = vmul.f32 1.442695, %v367_v55 }
 0x113   :  { %231 = vpow2.f32 %v138_v56 }
 0x114   :  { %233 = vpow2.f32 %v118_v57 }
 0x116   :  { %v135_v58 = vpop.xlane.xlu2 %134 }
 0x117   :  { %v371_v59 = vsub.f32 %v111_v50, %v135_v58  ;;  %v115_v60 = vpop.xlane.xlu1 %114 }
 0x118   :  { %v373_v61 = vsub.f32 %v109_v51, %v115_v60 }
 0x119   :  { %v232_v62 = vpop.eup %231  ;;  %v140_v63 = vmul.f32 1.442695, %v371_v59 }
 0x11a   :  { %v234_v0 = vpop.eup %233  ;;  %v120_v1 = vmul.f32 1.442695, %v373_v61  ;;  %142 = vadd.xlane.f32.xlu2 %v232_v62 }
 0x11b   :  { %235 = vpow2.f32 %v140_v63  ;;  %122 = vadd.xlane.f32.xlu1 %v234_v0 }
 0x11c   :  { %237 = vpow2.f32 %v120_v1 }
 0x121   :  { %v236_v2 = vpop.eup %235 }
 0x122   :  { %v238_v3 = vpop.eup %237  ;;  %144 = vadd.xlane.f32.xlu0 %v236_v2 }
 0x123   :  { %124 = vadd.xlane.f32.xlu2 %v238_v3 }
 0x18d   :  { %v143_v4 = vpop.xlane.xlu2 %142 }
 0x18e   :  { %239 = vrcp.f32 %v143_v4  ;;  %v123_v5 = vpop.xlane.xlu1 %122  ;;  %v157_v16 = vand.u32 2147483648, %v143_v4  ;;  %vm151_vm13 = vweird.f32 %v143_v4  ;;  %v155_v19 = vand.u32 2147483647, %v143_v4 }
 0x18f   :  { %241 = vlog2.f32 %v123_v5 }
 0x190   :  { %243 = vlog2.f32 %v143_v4  ;;  %v158_v27 = vor.u32 1.1754944e-38, %v157_v16  ;;  %vm156_vm15 = vcmp.eq.f32.partialorder %v155_v19, 8.507059e+37 }
 0x194   :  { %v240_v6 = vpop.eup %239 }
 0x195   :  { %v147_v7 = vmul.f32 %v240_v6, %v143_v4  ;;  %v145_v8 = vpop.xlane.xlu0 %144  ;;  %v242_v12 = vpop.eup %241  ;;  %vm152_vm12 = vweird.f32 %v240_v6 }
 0x196   :  { %245 = vrcp.f32 %v145_v8  ;;  %v125_v9 = vpop.xlane.xlu2 %124  ;;  %v244_v13 = vpop.eup %243  ;;  %v127_v21 = vmul.f32 0.6931472, %v242_v12  ;;  %vm153_vm14 = vmor %vm151_vm13, %vm152_vm12  ;;  %v171_v28 = vand.u32 2147483648, %v145_v8  ;;  %v169_v30 = vand.u32 2147483647, %v145_v8 }
 0x197   :  { %v148_v10 = vsub.f32 1.0, %v147_v7  ;;  %247 = vlog2.f32 %v125_v9  ;;  %v177_v22 = vmul.f32 0.6931472, %v244_v13  ;;  %vm165_vm1 = vweird.f32 %v145_v8 }
 0x198   :  { %249 = vlog2.f32 %v145_v8  ;;  %v130_v31 = vsub.f32 %v367_v55, %v127_v21  ;;  %v172_v37 = vor.u32 1.1754944e-38, %v171_v28  ;;  %vm170_vm3 = vcmp.eq.f32.partialorder %v169_v30, 8.507059e+37 }
 0x199   :  { %v149_v11 = vmul.f32 %v240_v6, %v148_v10  ;;  %v180_v35 = vsub.f32 %v365_v53, %v177_v22 }
 0x19b   :  { %v150_v14 = vadd.f32 %v240_v6, %v149_v11  ;;  %v182_v42 = vsub.f32 %v180_v35, %v130_v31 }
 0x19c   :  { %v246_v15 = vpop.eup %245 }
 0x19d   :  { %v248_v17 = vpop.eup %247  ;;  %v161_v18 = vmul.f32 %v246_v15, %v145_v8  ;;  %v154_v25 = vsel %vm153_vm14, %v240_v6, %v150_v14  ;;  %vm166_vm0 = vweird.f32 %v246_v15 }
 0x19e   :  { %v250_v20 = vpop.eup %249  ;;  %v129_v24 = vmul.f32 0.6931472, %v248_v17  ;;  %v159_v32 = vsel %vm156_vm15, %v158_v27, %v154_v25  ;;  %vm167_vm2 = vmor %vm165_vm1, %vm166_vm0 }
 0x19f   :  { %v162_v23 = vsub.f32 1.0, %v161_v18  ;;  %v179_v26 = vmul.f32 0.6931472, %v250_v20  ;;  %v174_v39 = vmul.f32 %v232_v62, %v159_v32 }
 0x1a0   :  { %v131_v33 = vsub.f32 %v373_v61, %v129_v24 }
 0x1a1   :  { %v163_v29 = vmul.f32 %v246_v15, %v162_v23  ;;  %v181_v36 = vsub.f32 %v371_v59, %v179_v26  ;;  %v184_v44 = vmul.f32 %v182_v42, %v174_v39 }
 0x1a3   :  { %v164_v34 = vadd.f32 %v246_v15, %v163_v29  ;;  %v183_v43 = vsub.f32 %v181_v36, %v131_v33 }
 0x1a5   :  { %v168_v38 = vsel %vm167_vm2, %v246_v15, %v164_v34 }
 0x1a6   :  { %v173_v40 = vsel %vm170_vm3, %v172_v37, %v168_v38 }
 0x1a7   :  { %v175_v41 = vmul.f32 %v236_v2, %v173_v40 }
 0x1a9   :  { %v185_v45 = vmul.f32 %v183_v43, %v175_v41 }
 0x1ab   :  { %v186_v46 = vadd.f32 %v185_v45, %v184_v44 }
 0x1ad   :  { %187 = vadd.xlane.f32.xlu0 %v186_v46 }
 0x220   :  { %v188_v47 = vpop.xlane.xlu0 %187 }
 0x221   :  { %v189_v48 = vrot.slane %v188_v47, 4 }
 0x223   :  { %v190_v49 = vadd.f32 %v189_v48, %v188_v47 }
 0x225   :  { %v191_v50 = vrot.slane %v190_v49, 2 }
 0x227   :  { %v192_v51 = vadd.f32 %v191_v50, %v190_v49 }
 0x229   :  { %v193_v52 = vrot.slane %v192_v51, 1 }
 0x22b   :  { %v194_v53 = vadd.f32 %v193_v52, %v192_v51 }
 0x22d   :  { %216 = vpush %v194_v53 }
 0x25e   :  { %s217_s24 = spop %216 }
 0x25f   :  { %v196_v54 = vstv %s217_s24 }
 0x260   :  { %197 = vst [vmem:[#allocation7] sm:$0xff] %v196_v54 }
 0x261   :  { %208 = dma.vmem_to_hbm [thread:$0]  %s204_s23, 128, %s206_s21, [#allocation4]  }
 0x262   :  { %327 = dma.done.wait [#allocation4], 128  }
 0x263   :  { %328 = vsyncadd [#allocation4], 4294967168 }
 0x264   :  { %213 = vsyncpa [#allocation3], 1 }
 0x265   :  { %214 = vsyncpa [#allocation6], 1 }
 0x266   :  { %215 = vsyncpa [#allocation4], 1 }

</bundles_post_ra>
